<compile_context>
chip_gen: v5e
topology: v5e:2x2
jax: 0.10.0
libtpu: 0.0.40
codegen_flags: <defaults>
</compile_context>

<pallas_src>
from functools import partial

import jax
import jax.numpy as jnp
from jax.experimental import pallas as pl
from jax.experimental.pallas import tpu as pltpu


# ---------------------------------------------------------------------------
# Tiling helpers
# ---------------------------------------------------------------------------
_VMEM_LIMIT_BYTES = 48 * 1024 * 1024     # raised scoped-VMEM limit (OK on v5e/v6e/v7x)
_BLOCK_VMEM_BUDGET = 32 * 1024 * 1024    # budget for the double-buffered pipelined blocks
_MAX_ROW_TILE = 8192                     # ~24 MiB of blocks at D=128 f32, double-buffered
_LANE = 128


def _round_up(v, m):
    return ((v + m - 1) // m) * m


def _choose_row_tile(total_rows, per_row_bytes):
    """Pick the row-tile size.

    `per_row_bytes` must already account for lane padding of every pipelined
    stream (x + rand + out).  The cap is sized against a double-buffered VMEM
    budget; the grid is forced to have at least 2 (ideally an even number of)
    tiles so both v7x TensorCores get work.
    """
    cap = _BLOCK_VMEM_BUDGET // (2 * per_row_bytes)          # 2 = double buffering
    cap = max(8, min(_MAX_ROW_TILE, (cap // 8) * 8))
    ntiles = max(2, -(-total_rows // cap))
    if ntiles % 2:
        ntiles += 1
    tn = _round_up(-(-total_rows // ntiles), 8)
    return max(8, min(tn, cap))


# ---------------------------------------------------------------------------
# Pallas kernels:  out = rand + x @ PW + bias (+ depot/end edge rows)
# ---------------------------------------------------------------------------
def _node_adapter_kernel_edges(n_nodes, row_tile,
                               x_ref, rand_ref, pw_ref, e_ref, b_ref, out_ref):
    f32 = jnp.float32
    proj = jnp.dot(x_ref[...].astype(f32), pw_ref[...],
                   preferred_element_type=f32)                       # (TN, D)
    acc = rand_ref[...].astype(f32) + proj + b_ref[...]
    # Depot / end-node selector computed in-kernel from the static node count
    # (no HBM mask, no extra DMA stream).  Padded rows of a ragged last tile
    # compute garbage positions but are never written back.
    row0 = pl.program_id(0) * row_tile
    pos = (row0 + jax.lax.broadcasted_iota(jnp.int32, (row_tile, 1), 0)) % n_nodes
    acc = acc + (pos == 0).astype(f32) * e_ref[0:1, :]
    acc = acc + (pos == n_nodes - 1).astype(f32) * e_ref[1:2, :]
    out_ref[...] = acc.astype(out_ref.dtype)


def _node_adapter_kernel_plain(x_ref, rand_ref, pw_ref, b_ref, out_ref):
    f32 = jnp.float32
    proj = jnp.dot(x_ref[...].astype(f32), pw_ref[...],
                   preferred_element_type=f32)                       # (TN, D)
    acc = rand_ref[...].astype(f32) + proj + b_ref[...]
    out_ref[...] = acc.astype(out_ref.dtype)


def fused_adapter_project(x, rand, P, W, b, p_first=None, p_last=None):
    """out[b, i] = rand[b, i] + (x[b, i] @ P) @ W + b
                   + [i == 0]   * (p_first @ W)     (only when p_first is given)
                   + [i == N-1] * (p_last  @ W)     (only when p_last  is given)

    x: (B,N,F), rand: (B,N,D), P: (F,low), p_first/p_last: (low,), W: (low,D), b: (D,)
    """
    B, N, F = x.shape
    D = rand.shape[-1]
    f32 = jnp.float32
    has_edges = p_first is not None

    # Host-side folding (tiny: F, low <= 8).
    Wf = W.astype(f32)
    PW = P.astype(f32) @ Wf                                          # (F, D)
    bias = b.astype(f32).reshape(1, D)
    if has_edges:
        E = jnp.stack([p_first.astype(f32) @ Wf,
                       p_last.astype(f32) @ Wf], axis=0)             # (2, D)

    # Lane-dense stores: pad the embedding axis to a multiple of 128, slice after.
    D_pad = _round_up(D, _LANE)
    if D_pad != D:
        wpad = [(0, 0), (0, D_pad - D)]
        PW = jnp.pad(PW, wpad)
        bias = jnp.pad(bias, wpad)
        if has_edges:
            E = jnp.pad(E, wpad)
        rand = jnp.pad(rand, [(0, 0), (0, 0), (0, D_pad - D)])

    # Flatten rows so the grid is long and tiles are big.
    R = B * N
    x2 = x.reshape(R, F)
    r2 = rand.reshape(R, D_pad)

    x_item = jnp.dtype(x.dtype).itemsize
    io_item = jnp.dtype(rand.dtype).itemsize
    # Lane-padded per-row VMEM footprint of the pipelined streams (x + rand + out).
    per_row = _round_up(F, _LANE) * x_item + 2 * D_pad * io_item
    TN = _choose_row_tile(R, per_row)
    ntiles = -(-R // TN)

    cost = pl.CostEstimate(
        flops=2 * R * (F + (2 if has_edges else 0)) * D_pad,
        transcendentals=0,
        bytes_accessed=R * (F * x_item + 2 * D_pad * io_item),
    )

    in_specs = [
        pl.BlockSpec((TN, F), lambda t: (t, 0)),       # node feature rows
        pl.BlockSpec((TN, D_pad), lambda t: (t, 0)),   # rand emb rows
        pl.BlockSpec((F, D_pad), lambda t: (0, 0)),    # folded P @ W (fetched once)
    ]
    if has_edges:
        kernel = partial(_node_adapter_kernel_edges, N, TN)
        in_specs += [
            pl.BlockSpec((2, D_pad), lambda t: (0, 0)),   # [p_first@W ; p_last@W]
            pl.BlockSpec((1, D_pad), lambda t: (0, 0)),   # projection bias
        ]
        operands = (x2, r2, PW, E, bias)
    else:
        kernel = _node_adapter_kernel_plain
        in_specs += [pl.BlockSpec((1, D_pad), lambda t: (0, 0))]      # projection bias
        operands = (x2, r2, PW, bias)

    out = pl.pallas_call(
        kernel,
        out_shape=jax.ShapeDtypeStruct((R, D_pad), rand.dtype),
        grid_spec=pltpu.PrefetchScalarGridSpec(
            num_scalar_prefetch=0,
            grid=(ntiles,),
            in_specs=in_specs,
            out_specs=pl.BlockSpec((TN, D_pad), lambda t: (t, 0)),
        ),
        compiler_params=pltpu.CompilerParams(
            dimension_semantics=("parallel",),
            vmem_limit_bytes=_VMEM_LIMIT_BYTES),
        cost_estimate=cost,
    )(*operands)

    out = out.reshape(B, N, D_pad)
    if D_pad != D:
        out = out[..., :D]
    return out


# ---------------------------------------------------------------------------
# Parameter init (deterministic, mirrors NodeAdapter.__init__ shapes)
# ---------------------------------------------------------------------------
def init_node_adapter_params(dim_emb, adapter_low_dim=8, is_finetuning=False,
                             seed=0):
    low = adapter_low_dim
    params = {
        "tsp":    jnp.ones((2, low), jnp.float32),
        "cvrp":   jnp.ones((4, low), jnp.float32),
        "cvrptw": jnp.ones((8, low), jnp.float32),
        "op":     jnp.ones((4, low), jnp.float32),
        "kp":     jnp.ones((3, low), jnp.float32),
        "upms":   jnp.ones((2, low), jnp.float32),
        "jssp1":  jnp.ones((2, low), jnp.float32),
        "jssp2":  jnp.ones((1, low), jnp.float32),
    }
    if is_finetuning:
        params.update({
            "sop":    jnp.ones((1, low), jnp.float32),
            "trp":    jnp.ones((1, low), jnp.float32),
            "pctsp":  jnp.ones((5, low), jnp.float32),
            "ocvrp":  jnp.ones((4, low), jnp.float32),
            "sdcvrp": jnp.ones((4, low), jnp.float32),
            "dcvrp":  jnp.ones((5, low), jnp.float32),
            "mclp":   jnp.ones((2, low), jnp.float32),
            "ossp1":  jnp.ones((2, low), jnp.float32),
            "ossp2":  jnp.ones((1, low), jnp.float32),
        })
    # nn.Linear(low, dim_emb): U(-1/sqrt(low), 1/sqrt(low)); stored transposed (low, D).
    kw, kb = jax.random.split(jax.random.PRNGKey(seed))
    bound = 1.0 / (low ** 0.5)
    params["proj_w"] = jax.random.uniform(kw, (low, dim_emb), jnp.float32,
                                          -bound, bound)
    params["proj_b"] = jax.random.uniform(kb, (dim_emb,), jnp.float32,
                                          -bound, bound)
    return params


# ---------------------------------------------------------------------------
# Forward dispatch (glue in plain JAX; hot path in the Pallas kernel)
# ---------------------------------------------------------------------------
def node_adapter_forward(params, node_features, node_rand_emb, problem_data):
    name = problem_data["problem_name"]
    W, b = params["proj_w"], params["proj_b"]

    def project(x):  # tiny parameter-tensor projection: glue, not hot path
        return x @ W + b

    if name in ("mvc", "mis"):
        return node_rand_emb

    if name == "tsp":
        od = project(params["tsp"])                              # (2, D)
        node_emb = node_rand_emb.at[:, 0, :].add(od[0])
        return node_emb.at[:, -1, :].add(od[1])

    if name in ("trp", "sop"):
        o = project(params[name])                                # (1, D)
        return node_rand_emb.at[:, 0, :].add(o[0])

    if name in ("cvrp", "cvrptw", "op", "ocvrp", "sdcvrp", "dcvrp", "pctsp"):
        p = params[name]
        return fused_adapter_project(node_features, node_rand_emb,
                                     p[:-2], W, b,
                                     p_first=p[-2], p_last=p[-1])

    if name in ("jssp", "ossp"):
        p_task, p_machine = params[name + "1"], params[name + "2"]
        task_x, machine_x = node_features                        # tuple of arrays
        nt = task_x.shape[1]
        task_emb = fused_adapter_project(task_x, node_rand_emb[:, :nt],
                                         p_task, W, b)           # no edge rows
        machine_emb = fused_adapter_project(machine_x, node_rand_emb[:, nt:],
                                            p_machine, W, b)     # no edge rows
        return jnp.concatenate([task_emb, machine_emb], axis=1)

    if name == "upms":
        p = params["upms"]
        num_jobs = problem_data["num_jobs"]
        machine_emb = fused_adapter_project(node_features,
                                            node_rand_emb[:, num_jobs:],
                                            p[0:1], W, b)        # no edge rows
        task_origin = project(p[1])                              # (D,)
        task_part = node_rand_emb[:, :num_jobs].at[:, 0, :].add(task_origin)
        return jnp.concatenate([task_part, machine_emb], axis=1)

    # generic branch (e.g. 'kp'): rand + Linear(features @ params[name])
    p = params[name]
    return fused_adapter_project(node_features, node_rand_emb, p, W, b)


# ---------------------------------------------------------------------------
# Pure-JAX references for checking
# ---------------------------------------------------------------------------
def _ref_cvrp(params, x, rand):
    p = params["cvrp"]
    proto = x @ p[:-2]
    proto = proto.at[:, 0, :].add(p[-2])
    proto = proto.at[:, -1, :].add(p[-1])
    return rand + proto @ params["proj_w"] + params["proj_b"]


def _ref_generic(params, name, x, rand):
    proto = x @ params[name]
    return rand + proto @ params["proj_w"] + params["proj_b"]


if __name__ == "__main__":
    B, N, LOW = 2, 16, 8
    D = 128   # production-style 128-aligned embedding width

    params = init_node_adapter_params(dim_emb=D, adapter_low_dim=LOW, seed=0)

    key = jax.random.PRNGKey(0)
    k1, k2, k3 = jax.random.split(key, 3)
    node_rand_emb = jax.random.normal(k1, (B, N, D), jnp.float32)

    # --- cvrp branch (edges path): features = 2-d coords ---
    x_cvrp = jax.random.normal(k2, (B, N, 2), jnp.float32)
    out_cvrp = node_adapter_forward(params, x_cvrp, node_rand_emb,
                                    {"problem_name": "cvrp"})
    jax.block_until_ready(out_cvrp)
    ref_cvrp = _ref_cvrp(params, x_cvrp, node_rand_emb)
    assert jnp.allclose(out_cvrp, ref_cvrp, atol=1e-5, rtol=1e-5)

    # --- generic branch ('kp', no-edges kernel variant): features (B, N, 3) ---
    x_kp = jax.random.normal(k3, (B, N, 3), jnp.float32)
    out_kp = node_adapter_forward(params, x_kp, node_rand_emb,
                                  {"problem_name": "kp"})
    jax.block_until_ready(out_kp)
    ref_kp = _ref_generic(params, "kp", x_kp, node_rand_emb)
    assert jnp.allclose(out_kp, ref_kp, atol=1e-5, rtol=1e-5)

    # --- non-128-aligned embedding exercises the pad + slice (lane-dense store) path ---
    D_small = 32
    params32 = init_node_adapter_params(dim_emb=D_small, adapter_low_dim=LOW, seed=1)
    rand32 = jax.random.normal(k1, (B, N, D_small), jnp.float32)
    out32 = node_adapter_forward(params32, x_cvrp, rand32,
                                 {"problem_name": "cvrp"})
    jax.block_until_ready(out32)
    ref32 = _ref_cvrp(params32, x_cvrp, rand32)
    assert jnp.allclose(out32, ref32, atol=1e-5, rtol=1e-5)

    print("KERNEL_OK")
</pallas_src>

<mosaic_0001>
module attributes {stable_mosaic.version = 11 : i64} {
  func.func @_node_adapter_kernel_edges(%arg0: i32, %arg1: memref<16x2xf32, #tpu.memory_space<vmem>>, %arg2: memref<16x128xf32, #tpu.memory_space<vmem>>, %arg3: memref<2x128xf32, #tpu.memory_space<vmem>>, %arg4: memref<2x128xf32, #tpu.memory_space<vmem>>, %arg5: memref<1x128xf32, #tpu.memory_space<vmem>>, %arg6: memref<16x128xf32, #tpu.memory_space<vmem>>) attributes {dimension_semantics = [#tpu.dimension_semantics<parallel>], iteration_bounds = array<i64: 2>, scalar_prefetch = 0 : i64, scratch_operands = 0 : i64, tpu.core_type = #tpu.core_type<tc>, window_params = [{transform_indices = @transform_0, window_bounds = array<i64: 16, 2>}, {transform_indices = @transform_1, window_bounds = array<i64: 16, 128>}, {pipeline_mode = #tpu.pipeline_mode<synchronous>, transform_indices = @transform_2, window_bounds = array<i64: 2, 128>}, {pipeline_mode = #tpu.pipeline_mode<synchronous>, transform_indices = @transform_3, window_bounds = array<i64: 2, 128>}, {pipeline_mode = #tpu.pipeline_mode<synchronous>, transform_indices = @transform_4, window_bounds = array<i64: 1, 128>}, {transform_indices = @transform_5, window_bounds = array<i64: 16, 128>}]} {
    %c0 = arith.constant 0 : index
    %c0_0 = arith.constant 0 : index
    %0 = vector.load %arg1[%c0, %c0_0] : memref<16x2xf32, #tpu.memory_space<vmem>>, vector<16x2xf32>
    %c0_1 = arith.constant 0 : index
    %c0_2 = arith.constant 0 : index
    %1 = vector.load %arg3[%c0_1, %c0_2] : memref<2x128xf32, #tpu.memory_space<vmem>>, vector<2x128xf32>
    %cst = arith.constant dense<0.000000e+00> : vector<16x128xf32>
    %2 = tpu.matmul %0, %1, %cst {dimension_numbers = #tpu.dot_dimension_numbers<[1], [0], [0], [1], [0, 0, 1, 1], [], []>} : vector<16x2xf32>, vector<2x128xf32>, vector<16x128xf32> -> vector<16x128xf32>
    %c0_3 = arith.constant 0 : index
    %c0_4 = arith.constant 0 : index
    %3 = vector.load %arg2[%c0_3, %c0_4] : memref<16x128xf32, #tpu.memory_space<vmem>>, vector<16x128xf32>
    %4 = arith.addf %3, %2 : vector<16x128xf32>
    %c0_5 = arith.constant 0 : index
    %c0_6 = arith.constant 0 : index
    %5 = vector.load %arg5[%c0_5, %c0_6] : memref<1x128xf32, #tpu.memory_space<vmem>>, vector<1x128xf32>
    %6 = vector.broadcast %5 : vector<1x128xf32> to vector<16x128xf32>
    %7 = arith.addf %4, %6 : vector<16x128xf32>
    %c16_i32 = arith.constant 16 : i32
    %8 = arith.muli %arg0, %c16_i32 : i32
    %9 = tpu.iota {dimensions = array<i32: 0>} : vector<16x1xi32>
    %10 = vector.broadcast %8 : i32 to vector<16x1xi32>
    %11 = arith.addi %10, %9 : vector<16x1xi32>
    %c16_i32_7 = arith.constant 16 : i32
    %c0_i32 = arith.constant 0 : i32
    %12 = arith.cmpi eq, %c16_i32_7, %c0_i32 : i32
    %c1_i32 = arith.constant 1 : i32
    %13 = arith.select %12, %c1_i32, %c16_i32_7 : i32
    %14 = vector.broadcast %13 : i32 to vector<16x1xi32>
    %15 = arith.remsi %11, %14 : vector<16x1xi32>
    %c0_i32_8 = arith.constant 0 : i32
    %16 = vector.broadcast %c0_i32_8 : i32 to vector<16x1xi32>
    %17 = arith.cmpi ne, %15, %16 : vector<16x1xi32>
    %c0_i32_9 = arith.constant 0 : i32
    %18 = vector.broadcast %c0_i32_9 : i32 to vector<16x1xi32>
    %19 = arith.cmpi slt, %15, %18 : vector<16x1xi32>
    %c0_i32_10 = arith.constant 0 : i32
    %20 = arith.cmpi slt, %13, %c0_i32_10 : i32
    %21 = vector.broadcast %20 : i1 to vector<16x1xi1>
    %22 = vector.broadcast %21 : vector<16x1xi1> to vector<16x1xi1>
    %23 = arith.xori %19, %22 : vector<16x1xi1>
    %24 = arith.andi %23, %17 : vector<16x1xi1>
    %25 = vector.broadcast %13 : i32 to vector<16x1xi32>
    %26 = arith.addi %15, %25 : vector<16x1xi32>
    %27 = arith.select %24, %26, %15 : vector<16x1xi1>, vector<16x1xi32>
    %c0_i32_11 = arith.constant 0 : i32
    %28 = vector.broadcast %c0_i32_11 : i32 to vector<16x1xi32>
    %29 = arith.cmpi eq, %27, %28 : vector<16x1xi32>
    %30 = arith.extui %29 : vector<16x1xi1> to vector<16x1xi32>
    %31 = arith.sitofp %30 : vector<16x1xi32> to vector<16x1xf32>
    %c0_12 = arith.constant 0 : index
    %c0_13 = arith.constant 0 : index
    %32 = vector.load %arg4[%c0_12, %c0_13] : memref<2x128xf32, #tpu.memory_space<vmem>>, vector<1x128xf32>
    %33 = vector.broadcast %31 : vector<16x1xf32> to vector<16x128xf32>
    %34 = vector.broadcast %32 : vector<1x128xf32> to vector<16x128xf32>
    %35 = arith.mulf %33, %34 : vector<16x128xf32>
    %36 = arith.addf %7, %35 : vector<16x128xf32>
    %c15_i32 = arith.constant 15 : i32
    %37 = vector.broadcast %c15_i32 : i32 to vector<16x1xi32>
    %38 = arith.cmpi eq, %27, %37 : vector<16x1xi32>
    %39 = arith.extui %38 : vector<16x1xi1> to vector<16x1xi32>
    %40 = arith.sitofp %39 : vector<16x1xi32> to vector<16x1xf32>
    %c1 = arith.constant 1 : index
    %c0_14 = arith.constant 0 : index
    %41 = vector.load %arg4[%c1, %c0_14] : memref<2x128xf32, #tpu.memory_space<vmem>>, vector<1x128xf32>
    %42 = vector.broadcast %40 : vector<16x1xf32> to vector<16x128xf32>
    %43 = vector.broadcast %41 : vector<1x128xf32> to vector<16x128xf32>
    %44 = arith.mulf %42, %43 : vector<16x128xf32>
    %45 = arith.addf %36, %44 : vector<16x128xf32>
    %c0_15 = arith.constant 0 : index
    %c0_16 = arith.constant 0 : index
    %46 = vector.load %arg6[%c0_15, %c0_16] : memref<16x128xf32, #tpu.memory_space<vmem>>, vector<16x128xf32>
    tpu.vector_store %arg6[%c0_15, %c0_16], %45 {strides = array<i32>} : memref<16x128xf32, #tpu.memory_space<vmem>>, vector<16x128xf32>,
    return
  }
  func.func @transform_0(%arg0: i32) -> (i32, i32) {
    %c0_i32 = arith.constant 0 : i32
    %c0_i32_0 = arith.constant 0 : i32
    return %arg0, %c0_i32 : i32, i32
  }
  func.func @transform_1(%arg0: i32) -> (i32, i32) {
    %c0_i32 = arith.constant 0 : i32
    %c0_i32_0 = arith.constant 0 : i32
    return %arg0, %c0_i32 : i32, i32
  }
  func.func @transform_2(%arg0: i32) -> (i32, i32) {
    %c0_i32 = arith.constant 0 : i32
    %c0_i32_0 = arith.constant 0 : i32
    %c0_i32_1 = arith.constant 0 : i32
    return %c0_i32, %c0_i32_0 : i32, i32
  }
  func.func @transform_3(%arg0: i32) -> (i32, i32) {
    %c0_i32 = arith.constant 0 : i32
    %c0_i32_0 = arith.constant 0 : i32
    %c0_i32_1 = arith.constant 0 : i32
    return %c0_i32, %c0_i32_0 : i32, i32
  }
  func.func @transform_4(%arg0: i32) -> (i32, i32) {
    %c0_i32 = arith.constant 0 : i32
    %c0_i32_0 = arith.constant 0 : i32
    %c0_i32_1 = arith.constant 0 : i32
    return %c0_i32, %c0_i32_0 : i32, i32
  }
  func.func @transform_5(%arg0: i32) -> (i32, i32) {
    %c0_i32 = arith.constant 0 : i32
    %c0_i32_0 = arith.constant 0 : i32
    return %arg0, %c0_i32 : i32, i32
  }
}

</mosaic_0001>

<bundles_post_ra>
// kernel: tpu_custom_call.1
= control target key start
LH: loop header
LB: loop body
LE: loop exit
PB: predicated region body
PF: predicated region fallthrough
CT: control target
= control target key end

     0   :  { %10 = vsyncpa [#allocation3], 0  ;;  %s722_s0 = inlined_call_operand.vmem [shape: f32[32,2], index: 0, kind: input, shape index: {}]   ;;  %s723_s1 = inlined_call_operand.vmem [shape: f32[32,128], index: 1, kind: input, shape index: {}]   ;;  %s724_s2 = inlined_call_operand.vmem [shape: f32[2,128], index: 2, kind: input, shape index: {}]   ;;  %s725_s3 = inlined_call_operand.vmem [shape: f32[2,128], index: 3, kind: input, shape index: {}]   ;;  %s726_s4 = inlined_call_operand.vmem [shape: f32[1,128], index: 4, kind: input, shape index: {}]   ;;  %s727_s5 = inlined_call_operand.hbm [shape: f32[32,128], index: 5, kind: output, shape index: {}]  }
   0x1   :  { %12 = vsyncpa [#allocation3 + $0x1], 0  ;;  %s608_s18 = smov 0   ;;  %s610_s19 = smov 0  }
   0x2   :  { %s612_s20 = smov 0   ;;  %s614_s21 = smov 0  }
   0x3 LB: > { %s629_s22 = sadd.s32 4294967295, %s573_s21   ;;  %s442_s23 = sadd.s32 4294967294, %s573_s21   ;;  %s573_s21 = sphi %s614_s21, %s733_s21   ;;  %s569_s20 = sphi %s612_s20, %s732_s20   ;;  %s565_s19 = sphi %s610_s19, %s731_s19   ;;  %s561_s18 = sphi %s608_s18, %s730_s18  }
   0x4   : > { %s633_s24 = sadd.s32 1, %s573_s21   ;;  %s140_s25 = sadd.s32 1, %s569_s20 }
   0x5   : > { %s137_s26 = ssub.s32 %s573_s21, %s633_s24  ;;  %p150_p0 = scmp.ne.s32.totalorder %s569_s20, %s565_s19 }
   0x6   : > { %p138_p1 = scmp.eq.s32.totalorder %s137_s26, 0  ;;  %p151_p2 = scmp.eq.s32.totalorder %s629_s22, 1 }
   0x7   : > { %p156_p3 = scmp.ne.s32.totalorder %s565_s19, %s561_s18  ;;  %p157_p4 = scmp.eq.s32.totalorder %s442_s23, 1 }
   0x8   : > { %s644_s27 = scalar_select %p138_p1, %s569_s20, %s140_s25  }
   0x9   : > { %p646_p5 = por %p151_p2, %p150_p0  ;;  %p650_p6 = por %p157_p4, %p156_p3 }
   0xa   : > { %p445_p7 = scmp.ge.s32.totalorder %s573_s21, 1  ;;  %p202_p8 = scmp.lt.s32.totalorder %s573_s21, 3 }
   0xc   : > { %p203_p9 = pnand %p445_p7, %p202_p8 }
   0xd   : > { %s447_s7 = sshll.u32 (!%p203_p9), %s629_s22, 1  ;;  %s454_s12 = sshll.u32 (!%p203_p9), %s629_s22, 4 }
   0xe   : > { %206 = sbr.rel (%p203_p9) target bundleno = 162 (0xa2), region = 40  ;;  %p236_p10 = scmp.lt.s32.totalorder (!%p203_p9), %s447_s7, 3 }
   0xf   : > { %s232_s13 = sand.u32 (!%p203_p9), 1, %s565_s19   ;;  %s364_s10 = scalar_lea.hbm (!%p203_p9), %s727_s5, %s454_s12 }
  0x10   : > { %s446_s25 = sshll.u32 (!%p203_p9), %s232_s13, 4  ;;  %s367_s15 = sshll.u32 (!%p203_p9), %s364_s10, 4  ;;  %s368_s15 = int_to_ptr.hbm [resolvable:$true] %s367_s15 }
  0x11   : > { %s353_s22 = scalar_lea.sflag (!%p203_p9), [#allocation3], %s232_s13 }
  0x13   : > { %v250_v0 = vld [vmem:[%s724_s2] sm:$0x3]  ;;  %vm258_vm0 = vcmask 1041408   ;;  %s735_s7 = smov (!%p236_p10, %s447_s7), 3  ;;  %vm251_vm1 = vcmask 15360   ;;  %v296_v3 = vlaneseq  ;;  %v299_v5 = vstv %s454_s12  ;;  %s525_s12 = sshra.s32 %s368_s15, 4  ;;  %s526_s12 = int_to_ptr.hbm [resolvable:$true] %s525_s12 }
  0x14   : > { %451 = vmatpush.msk.msra.mxu0 %vm258_vm0, %v250_v0  ;;  %465 = vmatpush.msk.msra.mxu1 %vm258_vm0, %v250_v0  ;;  %s448_s8 = sshll.u32 %s735_s7, 3  ;;  %v509_v23 = vld [vmem:[%s725_s3] ss:$0 sm:$0xff]  ;;  %v575_v25 = vmov 0.0   ;;  %v510_v30 = vld [vmem:[%s725_s3 + $0x1] ss:$0 sm:$0xff]  ;;  %p532_p0 = scmp.lt.s32.totalorder %s526_s12, %s727_s5 }
  0x15   : > { %s239_s11 = scalar_lea.vmem %s722_s0, %s448_s8  ;;  %v297_v4 = vshrl.u32 %v296_v3, 7  ;;  %s245_s16 = scalar_lea.vmem %s723_s1, %s448_s8  ;;  %v508_v29 = vld [vmem:[%s726_s4] ss:$0 sm:$0xff] }
  0x16   : > { %v248_v1 = vld [vmem:[%s239_s11] sm:$0xff]  ;;  %v249_v2 = vld [vmem:[%s239_s11 + $0x8] sm:$0xff]  ;;  %s234_s11 = scalar_lea.vmem [#allocation2], %s446_s25  ;;  %s531_s25 = scalar_lea.hbm %s727_s5, 32 }
  0x17   : > { %452 = vmatmul.msk.f32.vlgmr.msra.gmra.mxu0 %vm251_vm1, %v248_v1  ;;  %453 = vmatmul.msk.f32.vlgmr.msra.gmra.mxu1 %vm251_vm1, %v249_v2  ;;  %v298_v6 = vadd.s32 8, %v297_v4  ;;  %v300_v7 = vadd.s32 %v299_v5, %v297_v4  ;;  %v285_v24 = vld [vmem:[%s245_s16] sm:$0xff]  ;;  %v286_v27 = vld [vmem:[%s245_s16 + $0x8] sm:$0xff]  ;;  %s365_s14 = sshll.u32 %s234_s11, 4  ;;  %s527_s16 = scalar_lea.hbm %s526_s12, 16  ;;  %s366_s14 = int_to_ptr.vmem [resolvable:$true] %s365_s14 }
  0x18   : > { %p528_p11 = scmp.ne.s32.totalorder %s526_s12, %s527_s16  ;;  %p533_p1 = scmp.lt.s32.totalorder %s531_s25, %s527_s16 }
  0x19   : > { %v301_v8 = vadd.s32 %v299_v5, %v298_v6  ;;  %v303_v9 = vsub.s32 0, %v300_v7  ;;  %vm302_vm2 = vcmp.lt.s32.totalorder %v300_v7, 0 }
  0x1a   : > { %p529_p12 = pnand %p528_p11, %p646_p5  ;;  %p534_p2 = por %p533_p1, %p532_p0 }
  0x1b   : > { %v310_v10 = vsub.s32 0, %v301_v8  ;;  %vm309_vm3 = vcmp.lt.s32.totalorder %v301_v8, 0  ;;  %v304_v11 = vsel %vm302_vm2, %v303_v9, %v300_v7 }
  0x1c   : > { %v306_v13 = vand.u32 15, %v304_v11  ;;  %p530_p13 = pneg %p529_p12 }
  0x1d   : > { %v311_v12 = vsel %vm309_vm3, %v310_v10, %v301_v8 }
  0x1e   : > { %v313_v14 = vand.u32 15, %v311_v12  ;;  %v307_v15 = vsub.s32 0, %v306_v13  ;;  %p535_p3 = pnand %p534_p2, %p530_p13 }
  0x20   : > { %v314_v16 = vsub.s32 0, %v313_v14  ;;  %v308_v17 = vsel %vm302_vm2, %v307_v15, %v306_v13 }
  0x21   : > { %vm316_vm4 = vcmp.ne.s32.totalorder %v308_v17, 0  ;;  %vm318_vm5 = vcmp.lt.s32.totalorder %v308_v17, 0  ;;  %v322_v19 = vadd.s32 16, %v308_v17 }
  0x22   : > { %v315_v18 = vsel %vm309_vm3, %v314_v16, %v313_v14  ;;  %vm320_vm8 = vmand %vm318_vm5, %vm316_vm4 }
  0x23   : > { %vm317_vm6 = vcmp.ne.s32.totalorder %v315_v18, 0  ;;  %vm319_vm7 = vcmp.lt.s32.totalorder %v315_v18, 0  ;;  %v323_v20 = vadd.s32 16, %v315_v18  ;;  %v324_v21 = vsel %vm320_vm8, %v322_v19, %v308_v17 }
  0x24   : > { %vm321_vm9 = vmand %vm319_vm7, %vm317_vm6  ;;  %vm326_vm10 = vcmp.eq.s32.totalorder %v324_v21, 0  ;;  %vm338_vm12 = vcmp.eq.s32.totalorder %v324_v21, 15 }
  0x25   : > { %v325_v22 = vsel %vm321_vm9, %v323_v20, %v315_v18  ;;  %v455_v26 = vsel %vm326_vm10, 1.0, %v575_v25  ;;  %v457_v32 = vsel %vm338_vm12, 1.0, %v575_v25 }
  0x26   : > { %vm327_vm11 = vcmp.eq.s32.totalorder %v325_v22, 0  ;;  %vm339_vm13 = vcmp.eq.s32.totalorder %v325_v22, 15  ;;  %v334_v36 = vmul.f32 %v509_v23, %v455_v26  ;;  %v346_v40 = vmul.f32 %v510_v30, %v457_v32 }
  0x27   : > { %v456_v28 = vsel %vm327_vm11, 1.0, %v575_v25  ;;  %v458_v34 = vsel %vm339_vm13, 1.0, %v575_v25 }
  0x28   : > { %v335_v38 = vmul.f32 %v509_v23, %v456_v28  ;;  %v347_v42 = vmul.f32 %v510_v30, %v458_v34 }
  0x94   : > { %v279_v31 = vpop.f32.mrf.mxu0  ;;  %v282_v33 = vpop.f32.mrf.mxu1 }
  0x95   : > { %v287_v35 = vadd.f32 %v285_v24, %v279_v31  ;;  %v288_v37 = vadd.f32 %v286_v27, %v282_v33 }
  0x97   : > { %v293_v39 = vadd.f32 %v508_v29, %v287_v35  ;;  %v294_v41 = vadd.f32 %v508_v29, %v288_v37 }
  0x99   : > { %v336_v43 = vadd.f32 %v334_v36, %v293_v39  ;;  %v337_v44 = vadd.f32 %v335_v38, %v294_v41 }
  0x9b   : > { %v348_v45 = vadd.f32 %v346_v40, %v336_v43  ;;  %v349_v46 = vadd.f32 %v347_v42, %v337_v44 }
  0x9d   : > { %350 = vst [vmem:[%s234_s11] sm:$0xff] %v348_v45 }
  0x9e   : > { %351 = vst [vmem:[%s234_s11 + $0x8] sm:$0xff] %v349_v46 }
  0x9f   : > { %538 = shalt.err (!%p535_p3)
}
  0xa0   : > { %s576_s13 = smov 128   ;;  %s577_s6 = smov 8  }
  0xa1   : > { %466 = dma.vmem_to_hbm [thread:$0]  (%p646_p5), %s366_s14, 256, %s368_s15, %s353_s22, %s576_s13, %s576_s13, %s577_s6  }
  0xa2 PF: > { %p472_p4 = scmp.ge.s32.totalorder %s573_s21, 2  ;;  %s382_s7 = sand.u32 1, %s561_s18  }
  0xa3   : > { %s383_s8 = scalar_lea.sflag [#allocation3], %s382_s7 }
  0xa4   : > { %p469_p7 = pnand %p472_p4, %p650_p6 }
  0xa6   : > { %p470_p8 = pneg %p469_p7 }
  0xa8   : > { %556 = dma.done.wait (%p470_p8), %s383_s8, 256  }
  0xa9   : > { %558 = vsyncadd (%p470_p8), %s383_s8, 4294967040  ;;  %p15_p9 = scmp.ge.s32.totalorder %s633_s24, 4   ;;  %s730_s18 = smov %s565_s19 }
  0xaa   : > { %s731_s19 = smov %s569_s20  ;;  %s732_s20 = smov %s644_s27 }
  0xab   : > { %s733_s21 = smov %s633_s24  ;;  %17 = sbr.rel (!%p15_p9) target bundleno = 3 (0x3), region = 78 }
  0xb0   :  { %389 = vsyncpa [#allocation3], 1 }
  0xb1   :  { %391 = vsyncpa [#allocation3 + $0x1], 1 }

</bundles_post_ra>
